<compile_context>
chip_gen: v6e
topology: v6e:2x2x1
jax: 0.10.0
libtpu: 0.0.40
codegen_flags: <defaults>
</compile_context>

<pallas_src>
import functools

import jax
import jax.numpy as jnp
from jax.experimental import pallas as pl
from jax.experimental.pallas import tpu as pltpu


def _residual_linear_kernel(x_ref, wt_ref, b_ref, o_ref, *,
                            module_factor: float, input_factor: float):
    """Fused linear + scaled residual for one (TM, Hp) row tile.

    x_ref:  (TM, Hp)  input rows
    wt_ref: (Hp, Hp)  weight pre-transposed to (in_features, out_features)
    b_ref:  (1, Hp)   bias
    o_ref:  (TM, Hp)  output
    """
    x = x_ref[...]
    # Natively-shaped RHS: contract x dim 1 against wt dim 0 on the MXU,
    # accumulating in f32.
    y = jnp.dot(x, wt_ref[...], preferred_element_type=jnp.float32)
    y = y + b_ref[...].astype(jnp.float32)
    out = (y * jnp.float32(module_factor)
           + x.astype(jnp.float32) * jnp.float32(input_factor))
    o_ref[...] = out.astype(o_ref.dtype)


def _vmem_capacity_bytes() -> int:
    try:
        return int(pltpu.get_tpu_info().vmem_capacity_bytes)
    except Exception:
        return 64 * 1024 * 1024          # conservative (v7x per-TC)


def _choose_tm(m_rows: int, h_padded: int, act_bytes: int, w_bytes: int,
               budget: int) -> int:
    """Pick a row-tile size that fits the per-generation VMEM budget."""
    # Resident operands: single-buffered weight + bias.
    resident = h_padded * h_padded * w_bytes + h_padded * w_bytes
    avail = max(budget - resident, 1 << 20)
    # Per row of TM: double-buffered x-in + out tiles plus ~3 f32 temporaries
    # (matmul accumulator, f32 copy of x, f32 result before the cast).
    per_row = h_padded * (4 * act_bytes + 3 * 4)
    tm = int(avail // per_row)
    tm = min(tm, 1024)
    if tm >= m_rows:
        # Single block covering every row (block == full array dim is always
        # a legal block shape, whatever m_rows is).
        return m_rows
    # MXU-friendly alignment: 256 preferred (v6e/v7x 256-wide MXU), then 128
    # (v5e), then the 8-sublane minimum.
    for align in (256, 128, 8):
        if tm >= align:
            return (tm // align) * align
    return 8


def residual_connection_linear(x, weight, bias, *,
                               module_factor: float = 1.0,
                               input_factor: float = 1.0):
    """(Linear(x) * module_factor + x * input_factor).

    x:      (B, T, H)
    weight: (H, H)   PyTorch nn.Linear layout (out_features, in_features)
    bias:   (H,)
    """
    B, T, H = x.shape
    M = B * T
    act_bytes = jnp.dtype(x.dtype).itemsize
    w_bytes = jnp.dtype(weight.dtype).itemsize

    # One-time wrapper transpose to (in_features, out_features) so the kernel
    # contracts ((1,),(0,)) with no per-tile weight re-layout.
    w_t = weight.T

    # Lane-dense H: pad to a multiple of 128. Zero padding is exact -- padded
    # input cols / weight rows & cols / bias entries are zero; the extra
    # output columns are sliced away below. (No padding over M.)
    Hp = ((H + 127) // 128) * 128
    x2d = x.reshape(M, H)
    b = bias
    if Hp != H:
        x2d = jnp.pad(x2d, ((0, 0), (0, Hp - H)))
        w_t = jnp.pad(w_t, ((0, Hp - H), (0, Hp - H)))
        b = jnp.pad(b, ((0, Hp - H),))
    b2d = b.reshape(1, Hp)

    capacity = _vmem_capacity_bytes()
    budget = (capacity * 3) // 4                     # ~96 MiB v5e/v6e, ~48 MiB v7x
    TM = _choose_tm(M, Hp, act_bytes, w_bytes, budget)
    n_tiles = pl.cdiv(M, TM)                         # partial last block is clipped

    vmem_needed = (4 * TM * Hp * act_bytes           # double-buffered x-in + out tiles
                   + 3 * TM * Hp * 4                 # f32 intermediates
                   + Hp * Hp * w_bytes               # single-buffered resident weight
                   + Hp * w_bytes)                   # bias
    vmem_limit = int(min(max(vmem_needed + (8 << 20), 32 << 20),
                         capacity - (8 << 20)))      # stay below physical VMEM

    kernel = functools.partial(_residual_linear_kernel,
                               module_factor=module_factor,
                               input_factor=input_factor)

    cost = pl.CostEstimate(
        flops=2 * M * Hp * Hp,
        transcendentals=0,
        bytes_accessed=int(2 * M * Hp * act_bytes            # read x + write out
                           + (Hp * Hp + Hp) * w_bytes),      # weight + bias
    )

    def build_call(single_buffer_invariants: bool):
        inv_kwargs = {}
        if single_buffer_invariants and hasattr(pl, "Buffered"):
            inv_kwargs = dict(pipeline_mode=pl.Buffered(1))
        # TODO(synk): on v5e, sweeping pl.Buffered(3) on the x/out specs can
        # hide residual DMA latency if profiling shows exposed DMA.
        in_specs = [
            pl.BlockSpec((TM, Hp), lambda i: (i, 0)),                 # x row tile
            pl.BlockSpec((Hp, Hp), lambda i: (0, 0), **inv_kwargs),   # weight (resident)
            pl.BlockSpec((1, Hp), lambda i: (0, 0), **inv_kwargs),    # bias (resident)
        ]
        return pl.pallas_call(
            kernel,
            out_shape=jax.ShapeDtypeStruct((M, Hp), x.dtype),
            grid_spec=pl.GridSpec(
                grid=(n_tiles,),
                in_specs=in_specs,
                out_specs=pl.BlockSpec((TM, Hp), lambda i: (i, 0)),
            ),
            compiler_params=pltpu.CompilerParams(
                dimension_semantics=("parallel",),
                vmem_limit_bytes=vmem_limit),
            cost_estimate=cost,
        )

    try:
        out2d = build_call(True)(x2d, w_t, b2d)
    except Exception:
        # Fallback: default double-buffered invariants (correctness identical).
        out2d = build_call(False)(x2d, w_t, b2d)

    if Hp != H:
        out2d = out2d[:, :H]
    return out2d.reshape(B, T, H)


def reference(x, weight, bias, module_factor, input_factor):
    y = jnp.einsum("bth,oh->bto", x, weight) + bias
    return y * module_factor + x * input_factor


if __name__ == "__main__":
    key = jax.random.PRNGKey(0)
    k_x, k_w, k_b = jax.random.split(key, 3)

    batch, seq, hidden = 2, 8, 32
    module_factor = 0.5      # e.g. the 0.5 * FFN residual used in Conformer
    input_factor = 1.0

    x = jax.random.normal(k_x, (batch, seq, hidden), dtype=jnp.float32)
    # Deterministic synthetic nn.Linear(hidden, hidden) parameters.
    weight = jax.random.normal(k_w, (hidden, hidden), dtype=jnp.float32) * 0.05
    bias = jax.random.normal(k_b, (hidden,), dtype=jnp.float32) * 0.01

    out = residual_connection_linear(
        x, weight, bias,
        module_factor=module_factor, input_factor=input_factor)
    out = jax.block_until_ready(out)

    ref = reference(x, weight, bias, module_factor, input_factor)
    assert out.shape == (batch, seq, hidden)
    assert jnp.allclose(out, ref, atol=1e-5, rtol=1e-5), "mismatch vs reference"

    print("KERNEL_OK")
</pallas_src>

<mosaic_0001>
module attributes {stable_mosaic.version = 11 : i64} {
  func.func @_residual_linear_kernel(%arg0: i32, %arg1: memref<16x128xf32, #tpu.memory_space<vmem>>, %arg2: memref<128x128xf32, #tpu.memory_space<vmem>>, %arg3: memref<1x128xf32, #tpu.memory_space<vmem>>, %arg4: memref<16x128xf32, #tpu.memory_space<vmem>>) attributes {dimension_semantics = [#tpu.dimension_semantics<parallel>], iteration_bounds = array<i64: 1>, scalar_prefetch = 0 : i64, scratch_operands = 0 : i64, tpu.core_type = #tpu.core_type<tc>, window_params = [{transform_indices = @transform_0, window_bounds = array<i64: 16, 128>}, {pipeline_mode = #tpu.pipeline_mode<synchronous>, transform_indices = @transform_1, window_bounds = array<i64: 128, 128>}, {pipeline_mode = #tpu.pipeline_mode<synchronous>, transform_indices = @transform_2, window_bounds = array<i64: 1, 128>}, {transform_indices = @transform_3, window_bounds = array<i64: 16, 128>}]} {
    %c0 = arith.constant 0 : index
    %c0_0 = arith.constant 0 : index
    %0 = vector.load %arg1[%c0, %c0_0] : memref<16x128xf32, #tpu.memory_space<vmem>>, vector<16x128xf32>
    %c0_1 = arith.constant 0 : index
    %c0_2 = arith.constant 0 : index
    %1 = vector.load %arg2[%c0_1, %c0_2] : memref<128x128xf32, #tpu.memory_space<vmem>>, vector<128x128xf32>
    %cst = arith.constant dense<0.000000e+00> : vector<16x128xf32>
    %2 = tpu.matmul %0, %1, %cst {dimension_numbers = #tpu.dot_dimension_numbers<[1], [0], [0], [1], [0, 0, 1, 1], [], []>} : vector<16x128xf32>, vector<128x128xf32>, vector<16x128xf32> -> vector<16x128xf32>
    %c0_3 = arith.constant 0 : index
    %c0_4 = arith.constant 0 : index
    %3 = vector.load %arg3[%c0_3, %c0_4] : memref<1x128xf32, #tpu.memory_space<vmem>>, vector<1x128xf32>
    %4 = vector.broadcast %3 : vector<1x128xf32> to vector<16x128xf32>
    %5 = arith.addf %2, %4 : vector<16x128xf32>
    %cst_5 = arith.constant 5.000000e-01 : f32
    %6 = vector.broadcast %cst_5 : f32 to vector<16x128xf32>
    %7 = arith.mulf %5, %6 : vector<16x128xf32>
    %cst_6 = arith.constant 1.000000e+00 : f32
    %8 = vector.broadcast %cst_6 : f32 to vector<16x128xf32>
    %9 = arith.mulf %0, %8 : vector<16x128xf32>
    %10 = arith.addf %7, %9 : vector<16x128xf32>
    %c0_7 = arith.constant 0 : index
    %c0_8 = arith.constant 0 : index
    %11 = vector.load %arg4[%c0_7, %c0_8] : memref<16x128xf32, #tpu.memory_space<vmem>>, vector<16x128xf32>
    tpu.vector_store %arg4[%c0_7, %c0_8], %10 {strides = array<i32>} : memref<16x128xf32, #tpu.memory_space<vmem>>, vector<16x128xf32>,
    return
  }
  func.func @transform_0(%arg0: i32) -> (i32, i32) {
    %c0_i32 = arith.constant 0 : i32
    %c0_i32_0 = arith.constant 0 : i32
    return %arg0, %c0_i32 : i32, i32
  }
  func.func @transform_1(%arg0: i32) -> (i32, i32) {
    %c0_i32 = arith.constant 0 : i32
    %c0_i32_0 = arith.constant 0 : i32
    %c0_i32_1 = arith.constant 0 : i32
    return %c0_i32, %c0_i32_0 : i32, i32
  }
  func.func @transform_2(%arg0: i32) -> (i32, i32) {
    %c0_i32 = arith.constant 0 : i32
    %c0_i32_0 = arith.constant 0 : i32
    %c0_i32_1 = arith.constant 0 : i32
    return %c0_i32, %c0_i32_0 : i32, i32
  }
  func.func @transform_3(%arg0: i32) -> (i32, i32) {
    %c0_i32 = arith.constant 0 : i32
    %c0_i32_0 = arith.constant 0 : i32
    return %arg0, %c0_i32 : i32, i32
  }
}

module attributes {stable_mosaic.version = 11 : i64} {
  func.func @_residual_linear_kernel(%arg0: i32, %arg1: memref<16x128xf32, #tpu.memory_space<vmem>>, %arg2: memref<128x128xf32, #tpu.memory_space<vmem>>, %arg3: memref<1x128xf32, #tpu.memory_space<vmem>>, %arg4: memref<16x128xf32, #tpu.memory_space<vmem>>) attributes {dimension_semantics = [#tpu.dimension_semantics<parallel>], iteration_bounds = array<i64: 1>, scalar_prefetch = 0 : i64, scratch_operands = 0 : i64, tpu.core_type = #tpu.core_type<tc>, window_params = [{transform_indices = @transform_0, window_bounds = array<i64: 16, 128>}, {pipeline_mode = #tpu.pipeline_mode<synchronous>, transform_indices = @transform_1, window_bounds = array<i64: 128, 128>}, {pipeline_mode = #tpu.pipeline_mode<synchronous>, transform_indices = @transform_2, window_bounds = array<i64: 1, 128>}, {transform_indices = @transform_3, window_bounds = array<i64: 16, 128>}]} {
    %c0 = arith.constant 0 : index
    %c0_0 = arith.constant 0 : index
    %0 = vector.load %arg1[%c0, %c0_0] : memref<16x128xf32, #tpu.memory_space<vmem>>, vector<16x128xf32>
    %c0_1 = arith.constant 0 : index
    %c0_2 = arith.constant 0 : index
    %1 = vector.load %arg2[%c0_1, %c0_2] : memref<128x128xf32, #tpu.memory_space<vmem>>, vector<128x128xf32>
    %cst = arith.constant dense<0.000000e+00> : vector<16x128xf32>
    %2 = tpu.matmul %0, %1, %cst {dimension_numbers = #tpu.dot_dimension_numbers<[1], [0], [0], [1], [0, 0, 1, 1], [], []>} : vector<16x128xf32>, vector<128x128xf32>, vector<16x128xf32> -> vector<16x128xf32>
    %c0_3 = arith.constant 0 : index
    %c0_4 = arith.constant 0 : index
    %3 = vector.load %arg3[%c0_3, %c0_4] : memref<1x128xf32, #tpu.memory_space<vmem>>, vector<1x128xf32>
    %4 = vector.broadcast %3 : vector<1x128xf32> to vector<16x128xf32>
    %5 = arith.addf %2, %4 : vector<16x128xf32>
    %cst_5 = arith.constant 5.000000e-01 : f32
    %6 = vector.broadcast %cst_5 : f32 to vector<16x128xf32>
    %7 = arith.mulf %5, %6 : vector<16x128xf32>
    %cst_6 = arith.constant 1.000000e+00 : f32
    %8 = vector.broadcast %cst_6 : f32 to vector<16x128xf32>
    %9 = arith.mulf %0, %8 : vector<16x128xf32>
    %10 = arith.addf %7, %9 : vector<16x128xf32>
    %c0_7 = arith.constant 0 : index
    %c0_8 = arith.constant 0 : index
    %11 = vector.load %arg4[%c0_7, %c0_8] : memref<16x128xf32, #tpu.memory_space<vmem>>, vector<16x128xf32>
    tpu.vector_store %arg4[%c0_7, %c0_8], %10 {strides = array<i32>} : memref<16x128xf32, #tpu.memory_space<vmem>>, vector<16x128xf32>,
    return
  }
  func.func @transform_0(%arg0: i32) -> (i32, i32) {
    %c0_i32 = arith.constant 0 : i32
    %c0_i32_0 = arith.constant 0 : i32
    return %arg0, %c0_i32 : i32, i32
  }
  func.func @transform_1(%arg0: i32) -> (i32, i32) {
    %c0_i32 = arith.constant 0 : i32
    %c0_i32_0 = arith.constant 0 : i32
    %c0_i32_1 = arith.constant 0 : i32
    return %c0_i32, %c0_i32_0 : i32, i32
  }
  func.func @transform_2(%arg0: i32) -> (i32, i32) {
    %c0_i32 = arith.constant 0 : i32
    %c0_i32_0 = arith.constant 0 : i32
    %c0_i32_1 = arith.constant 0 : i32
    return %c0_i32, %c0_i32_0 : i32, i32
  }
  func.func @transform_3(%arg0: i32) -> (i32, i32) {
    %c0_i32 = arith.constant 0 : i32
    %c0_i32_0 = arith.constant 0 : i32
    return %arg0, %c0_i32 : i32, i32
  }
}

</mosaic_0001>

<bundles_post_ra>
// kernel: tpu_custom_call.1
= control target key start
LH: loop header
LB: loop body
LE: loop exit
PB: predicated region body
PF: predicated region fallthrough
CT: control target
= control target key end

     0   :  { %8 = vsyncpa [#allocation3], 0  ;;  %s338_s0 = inlined_call_operand.hbm [shape: f32[16,128], index: 0, kind: input, shape index: {}]   ;;  %s339_s1 = inlined_call_operand.hbm [shape: f32[128,128], index: 1, kind: input, shape index: {}]   ;;  %s340_s2 = inlined_call_operand.vmem [shape: f32[1,128], index: 2, kind: input, shape index: {}]   ;;  %s341_s3 = inlined_call_operand.hbm [shape: f32[16,128], index: 3, kind: output, shape index: {}]  }
   0x1   :  { %9 = vsyncpa [#allocation6], 0 }
   0x2   :  { %10 = vsyncpa [#allocation4], 0  ;;  %s292_s12 = smov [#allocation2]  }
   0x3   :  { %s16_s13 = sshll.u32 %s292_s12, 4  ;;  %s17_s13 = int_to_ptr.vmem [resolvable:$true] %s16_s13 }
   0x4   :  { %s234_s14 = scalar_lea.vmem %s17_s13, 256  ;;  %p239_p1 = scmp.lt.s32.totalorder %s17_s13, %s17_s13 }
   0x5   :  { %p235_p0 = scmp.ne.s32.totalorder %s17_s13, %s234_s14  ;;  %p240_p2 = scmp.lt.s32.totalorder %s234_s14, %s234_s14 }
   0x7   :  { %p241_p3 = por %p240_p2, %p239_p1 }
   0x9   :  { %p242_p4 = pnand %p241_p3, %p235_p0 }
   0xb   :  { %245 = shalt.err (!%p242_p4)
}
   0xc   :  { %s293_s15 = smov 128   ;;  %s294_s16 = smov 8  }
   0xd   :  { %22 = dma.hbm_to_vmem [thread:$0]  %s338_s0, 256, %s17_s13, [#allocation3], %s293_s15, %s293_s15, %s294_s16  }
   0xe   :  { %s295_s19 = smov [#allocation5]  }
   0xf   :  { %s28_s20 = sshll.u32 %s295_s19, 4  ;;  %s29_s20 = int_to_ptr.vmem [resolvable:$true] %s28_s20 }
  0x10   :  { %s254_s21 = scalar_lea.vmem %s29_s20, 2048  ;;  %p259_p6 = scmp.lt.s32.totalorder %s29_s20, %s29_s20 }
  0x11   :  { %p255_p5 = scmp.ne.s32.totalorder %s29_s20, %s254_s21  ;;  %p260_p7 = scmp.lt.s32.totalorder %s254_s21, %s254_s21 }
  0x13   :  { %p261_p8 = por %p260_p7, %p259_p6 }
  0x15   :  { %p262_p9 = pnand %p261_p8, %p255_p5 }
  0x17   :  { %265 = shalt.err (!%p262_p9)
}
  0x18   :  { %34 = dma.hbm_to_vmem [thread:$0]  %s339_s1, 2048, %s29_s20, [#allocation6], %s293_s15, %s293_s15, %s294_s16  }
  0x19   :  { %286 = dma.done.wait [#allocation3], 256  }
  0x1a   :  { %287 = vsyncadd [#allocation3], 4294967040 }
  0x1b   :  { %288 = dma.done.wait [#allocation6], 2048  }
  0x1c   :  { %289 = vsyncadd [#allocation6], 4294965248  ;;  %v60_v0 = vld [vmem:[#allocation5 + $0x78] sm:$0xff]  ;;  %v59_v1 = vld [vmem:[#allocation5 + $0x70] sm:$0xff]  ;;  %s296_s24 = smov [#allocation7]  }
  0x1d   :  { %186 = vmatprep.subr.mxu0 %v60_v0  ;;  %v58_v2 = vld [vmem:[#allocation5 + $0x68] sm:$0xff]  ;;  %v57_v3 = vld [vmem:[#allocation5 + $0x60] sm:$0xff]  ;;  %v43_v4 = vld [vmem:[#allocation2] sm:$0xff]  ;;  %s154_s25 = sshll.u32 %s296_s24, 4  ;;  %s155_s25 = int_to_ptr.vmem [resolvable:$true] %s154_s25 }
  0x1e   :  { %187 = vmatpush3.msra.mxu0 %v60_v0  ;;  %v56_v5 = vld [vmem:[#allocation5 + $0x58] sm:$0xff]  ;;  %218 = vmatprep.mubr.f32.mxu0 %v43_v4  ;;  %v55_v6 = vld [vmem:[#allocation5 + $0x50] sm:$0xff]  ;;  %v54_v7 = vld [vmem:[#allocation5 + $0x48] sm:$0xff]  ;;  %s266_s26 = scalar_lea.vmem %s155_s25, 256  ;;  %p271_p11 = scmp.lt.s32.totalorder %s155_s25, %s155_s25 }
  0x1f   :  { %188 = vmatprep.subr.mxu0 %v59_v1  ;;  %v53_v8 = vld [vmem:[#allocation5 + $0x40] sm:$0xff]  ;;  %v52_v9 = vld [vmem:[#allocation5 + $0x38] sm:$0xff]  ;;  %v51_v10 = vld [vmem:[#allocation5 + $0x30] sm:$0xff]  ;;  %p267_p10 = scmp.ne.s32.totalorder %s155_s25, %s266_s26  ;;  %p272_p12 = scmp.lt.s32.totalorder %s266_s26, %s266_s26 }
  0x20   :  { %189 = vmatpush3.msra.mxu0 %v59_v1  ;;  %v50_v11 = vld [vmem:[#allocation5 + $0x28] sm:$0xff]  ;;  %v49_v12 = vld [vmem:[#allocation5 + $0x20] sm:$0xff]  ;;  %v48_v13 = vld [vmem:[#allocation5 + $0x18] sm:$0xff] }
  0x21   :  { %190 = vmatprep.subr.mxu0 %v58_v2  ;;  %v47_v14 = vld [vmem:[#allocation5 + $0x10] sm:$0xff]  ;;  %v46_v15 = vld [vmem:[#allocation5 + $0x8] sm:$0xff]  ;;  %v45_v16 = vld [vmem:[#allocation5] sm:$0xff]  ;;  %p273_p13 = por %p272_p12, %p271_p11 }
  0x22   :  { %191 = vmatpush3.msra.mxu0 %v58_v2  ;;  %v44_v17 = vld [vmem:[#allocation2 + $0x8] sm:$0xff]  ;;  %v167_v18 = vld [vmem:[%s340_s2] ss:$0 sm:$0xff] }
  0x23   :  { %192 = vmatprep.subr.mxu0 %v57_v3  ;;  %p274_p0 = pnand %p273_p13, %p267_p10 }
  0x24   :  { %193 = vmatpush3.msra.mxu0 %v57_v3 }
  0x25   :  { %194 = vmatprep.subr.mxu0 %v56_v5 }
  0x26   :  { %195 = vmatpush3.msra.mxu0 %v56_v5 }
  0x27   :  { %196 = vmatprep.subr.mxu0 %v55_v6 }
  0x28   :  { %197 = vmatpush3.msra.mxu0 %v55_v6 }
  0x29   :  { %198 = vmatprep.subr.mxu0 %v54_v7 }
  0x2a   :  { %199 = vmatpush3.msra.mxu0 %v54_v7 }
  0x2b   :  { %200 = vmatprep.subr.mxu0 %v53_v8 }
  0x2c   :  { %201 = vmatpush3.msra.mxu0 %v53_v8 }
  0x2d   :  { %202 = vmatprep.subr.mxu0 %v52_v9 }
  0x2e   :  { %203 = vmatpush3.msra.mxu0 %v52_v9 }
  0x2f   :  { %204 = vmatprep.subr.mxu0 %v51_v10 }
  0x30   :  { %205 = vmatpush3.msra.mxu0 %v51_v10 }
  0x31   :  { %206 = vmatprep.subr.mxu0 %v50_v11 }
  0x32   :  { %207 = vmatpush3.msra.mxu0 %v50_v11 }
  0x33   :  { %208 = vmatprep.subr.mxu0 %v49_v12 }
  0x34   :  { %209 = vmatpush3.msra.mxu0 %v49_v12 }
  0x35   :  { %210 = vmatprep.subr.mxu0 %v48_v13 }
  0x36   :  { %211 = vmatpush3.msra.mxu0 %v48_v13 }
  0x37   :  { %212 = vmatprep.subr.mxu0 %v47_v14 }
  0x38   :  { %213 = vmatpush3.msra.mxu0 %v47_v14 }
  0x39   :  { %214 = vmatprep.subr.mxu0 %v46_v15 }
  0x3a   :  { %215 = vmatpush3.msra.mxu0 %v46_v15 }
  0x3b   :  { %216 = vmatprep.subr.mxu0 %v45_v16 }
  0x3c   :  { %217 = vmatpush3.msra.mxu0 %v45_v16 }
  0x3d   :  { %219 = vmatmul.mubr.f32.vlgmr.msra.gmra.mxu0 %v44_v17 }
  0xfd   :  { %v220_v19 = vpop.f32.mrf.mxu0 }
  0xfe   :  { %v140_v20 = vadd.f32 %v220_v19, %v167_v18 }
  0xff   :  { %v134_v21 = vpop.f32.mrf.mxu0 }
 0x100   :  { %v144_v22 = vmul.f32 0.5, %v140_v20  ;;  %v135_v23 = vadd.f32 %v167_v18, %v134_v21 }
 0x102   :  { %v146_v24 = vadd.f32 %v144_v22, %v44_v17  ;;  %v143_v25 = vmul.f32 0.5, %v135_v23 }
 0x104   :  { %148 = vst [vmem:[#allocation7 + $0x8] sm:$0xff] %v146_v24  ;;  %v145_v26 = vadd.f32 %v143_v25, %v43_v4 }
 0x106   :  { %147 = vst [vmem:[#allocation7] sm:$0xff] %v145_v26 }
 0x107   :  { %277 = shalt.err (!%p274_p0)
}
 0x108   :  { %160 = dma.vmem_to_hbm [thread:$0]  %s155_s25, 256, %s341_s3, [#allocation4], %s293_s15, %s293_s15, %s294_s16  }
 0x109   :  { %290 = dma.done.wait [#allocation4], 256  }
 0x10a   :  { %291 = vsyncadd [#allocation4], 4294967040 }
 0x10b   :  { %164 = vsyncpa [#allocation3], 1 }
 0x10c   :  { %165 = vsyncpa [#allocation6], 1 }
 0x10d   :  { %166 = vsyncpa [#allocation4], 1 }

// kernel: tpu_custom_call.1
= control target key start
LH: loop header
LB: loop body
LE: loop exit
PB: predicated region body
PF: predicated region fallthrough
CT: control target
= control target key end

     0   :  { %8 = vsyncpa [#allocation3], 0  ;;  %s338_s0 = inlined_call_operand.hbm [shape: f32[16,128], index: 0, kind: input, shape index: {}]   ;;  %s339_s1 = inlined_call_operand.hbm [shape: f32[128,128], index: 1, kind: input, shape index: {}]   ;;  %s340_s2 = inlined_call_operand.vmem [shape: f32[1,128], index: 2, kind: input, shape index: {}]   ;;  %s341_s3 = inlined_call_operand.hbm [shape: f32[16,128], index: 3, kind: output, shape index: {}]  }
   0x1   :  { %9 = vsyncpa [#allocation6], 0 }
   0x2   :  { %10 = vsyncpa [#allocation4], 0  ;;  %s292_s12 = smov [#allocation2]  }
   0x3   :  { %s16_s13 = sshll.u32 %s292_s12, 4  ;;  %s17_s13 = int_to_ptr.vmem [resolvable:$true] %s16_s13 }
   0x4   :  { %s234_s14 = scalar_lea.vmem %s17_s13, 256  ;;  %p239_p1 = scmp.lt.s32.totalorder %s17_s13, %s17_s13 }
   0x5   :  { %p235_p0 = scmp.ne.s32.totalorder %s17_s13, %s234_s14  ;;  %p240_p2 = scmp.lt.s32.totalorder %s234_s14, %s234_s14 }
   0x7   :  { %p241_p3 = por %p240_p2, %p239_p1 }
   0x9   :  { %p242_p4 = pnand %p241_p3, %p235_p0 }
   0xb   :  { %245 = shalt.err (!%p242_p4)
}
   0xc   :  { %s293_s15 = smov 128   ;;  %s294_s16 = smov 8  }
   0xd   :  { %22 = dma.hbm_to_vmem [thread:$0]  %s338_s0, 256, %s17_s13, [#allocation3], %s293_s15, %s293_s15, %s294_s16  }
   0xe   :  { %s295_s19 = smov [#allocation5]  }
   0xf   :  { %s28_s20 = sshll.u32 %s295_s19, 4  ;;  %s29_s20 = int_to_ptr.vmem [resolvable:$true] %s28_s20 }
  0x10   :  { %s254_s21 = scalar_lea.vmem %s29_s20, 2048  ;;  %p259_p6 = scmp.lt.s32.totalorder %s29_s20, %s29_s20 }
  0x11   :  { %p255_p5 = scmp.ne.s32.totalorder %s29_s20, %s254_s21  ;;  %p260_p7 = scmp.lt.s32.totalorder %s254_s21, %s254_s21 }
  0x13   :  { %p261_p8 = por %p260_p7, %p259_p6 }
  0x15   :  { %p262_p9 = pnand %p261_p8, %p255_p5 }
  0x17   :  { %265 = shalt.err (!%p262_p9)
}
  0x18   :  { %34 = dma.hbm_to_vmem [thread:$0]  %s339_s1, 2048, %s29_s20, [#allocation6], %s293_s15, %s293_s15, %s294_s16  }
  0x19   :  { %286 = dma.done.wait [#allocation3], 256  }
  0x1a   :  { %287 = vsyncadd [#allocation3], 4294967040 }
  0x1b   :  { %288 = dma.done.wait [#allocation6], 2048  }
  0x1c   :  { %289 = vsyncadd [#allocation6], 4294965248  ;;  %v60_v0 = vld [vmem:[#allocation5 + $0x78] sm:$0xff]  ;;  %v59_v1 = vld [vmem:[#allocation5 + $0x70] sm:$0xff]  ;;  %s296_s24 = smov [#allocation7]  }
  0x1d   :  { %186 = vmatprep.subr.mxu0 %v60_v0  ;;  %v58_v2 = vld [vmem:[#allocation5 + $0x68] sm:$0xff]  ;;  %v57_v3 = vld [vmem:[#allocation5 + $0x60] sm:$0xff]  ;;  %v43_v4 = vld [vmem:[#allocation2] sm:$0xff]  ;;  %s154_s25 = sshll.u32 %s296_s24, 4  ;;  %s155_s25 = int_to_ptr.vmem [resolvable:$true] %s154_s25 }
  0x1e   :  { %187 = vmatpush3.msra.mxu0 %v60_v0  ;;  %v56_v5 = vld [vmem:[#allocation5 + $0x58] sm:$0xff]  ;;  %218 = vmatprep.mubr.f32.mxu0 %v43_v4  ;;  %v55_v6 = vld [vmem:[#allocation5 + $0x50] sm:$0xff]  ;;  %v54_v7 = vld [vmem:[#allocation5 + $0x48] sm:$0xff]  ;;  %s266_s26 = scalar_lea.vmem %s155_s25, 256  ;;  %p271_p11 = scmp.lt.s32.totalorder %s155_s25, %s155_s25 }
  0x1f   :  { %188 = vmatprep.subr.mxu0 %v59_v1  ;;  %v53_v8 = vld [vmem:[#allocation5 + $0x40] sm:$0xff]  ;;  %v52_v9 = vld [vmem:[#allocation5 + $0x38] sm:$0xff]  ;;  %v51_v10 = vld [vmem:[#allocation5 + $0x30] sm:$0xff]  ;;  %p267_p10 = scmp.ne.s32.totalorder %s155_s25, %s266_s26  ;;  %p272_p12 = scmp.lt.s32.totalorder %s266_s26, %s266_s26 }
  0x20   :  { %189 = vmatpush3.msra.mxu0 %v59_v1  ;;  %v50_v11 = vld [vmem:[#allocation5 + $0x28] sm:$0xff]  ;;  %v49_v12 = vld [vmem:[#allocation5 + $0x20] sm:$0xff]  ;;  %v48_v13 = vld [vmem:[#allocation5 + $0x18] sm:$0xff] }
  0x21   :  { %190 = vmatprep.subr.mxu0 %v58_v2  ;;  %v47_v14 = vld [vmem:[#allocation5 + $0x10] sm:$0xff]  ;;  %v46_v15 = vld [vmem:[#allocation5 + $0x8] sm:$0xff]  ;;  %v45_v16 = vld [vmem:[#allocation5] sm:$0xff]  ;;  %p273_p13 = por %p272_p12, %p271_p11 }
  0x22   :  { %191 = vmatpush3.msra.mxu0 %v58_v2  ;;  %v44_v17 = vld [vmem:[#allocation2 + $0x8] sm:$0xff]  ;;  %v167_v18 = vld [vmem:[%s340_s2] ss:$0 sm:$0xff] }
  0x23   :  { %192 = vmatprep.subr.mxu0 %v57_v3  ;;  %p274_p0 = pnand %p273_p13, %p267_p10 }
  0x24   :  { %193 = vmatpush3.msra.mxu0 %v57_v3 }
  0x25   :  { %194 = vmatprep.subr.mxu0 %v56_v5 }
  0x26   :  { %195 = vmatpush3.msra.mxu0 %v56_v5 }
  0x27   :  { %196 = vmatprep.subr.mxu0 %v55_v6 }
  0x28   :  { %197 = vmatpush3.msra.mxu0 %v55_v6 }
  0x29   :  { %198 = vmatprep.subr.mxu0 %v54_v7 }
  0x2a   :  { %199 = vmatpush3.msra.mxu0 %v54_v7 }
  0x2b   :  { %200 = vmatprep.subr.mxu0 %v53_v8 }
  0x2c   :  { %201 = vmatpush3.msra.mxu0 %v53_v8 }
  0x2d   :  { %202 = vmatprep.subr.mxu0 %v52_v9 }
  0x2e   :  { %203 = vmatpush3.msra.mxu0 %v52_v9 }
  0x2f   :  { %204 = vmatprep.subr.mxu0 %v51_v10 }
  0x30   :  { %205 = vmatpush3.msra.mxu0 %v51_v10 }
  0x31   :  { %206 = vmatprep.subr.mxu0 %v50_v11 }
  0x32   :  { %207 = vmatpush3.msra.mxu0 %v50_v11 }
  0x33   :  { %208 = vmatprep.subr.mxu0 %v49_v12 }
  0x34   :  { %209 = vmatpush3.msra.mxu0 %v49_v12 }
  0x35   :  { %210 = vmatprep.subr.mxu0 %v48_v13 }
  0x36   :  { %211 = vmatpush3.msra.mxu0 %v48_v13 }
  0x37   :  { %212 = vmatprep.subr.mxu0 %v47_v14 }
  0x38   :  { %213 = vmatpush3.msra.mxu0 %v47_v14 }
  0x39   :  { %214 = vmatprep.subr.mxu0 %v46_v15 }
  0x3a   :  { %215 = vmatpush3.msra.mxu0 %v46_v15 }
  0x3b   :  { %216 = vmatprep.subr.mxu0 %v45_v16 }
  0x3c   :  { %217 = vmatpush3.msra.mxu0 %v45_v16 }
  0x3d   :  { %219 = vmatmul.mubr.f32.vlgmr.msra.gmra.mxu0 %v44_v17 }
  0xfd   :  { %v220_v19 = vpop.f32.mrf.mxu0 }
  0xfe   :  { %v140_v20 = vadd.f32 %v220_v19, %v167_v18 }
  0xff   :  { %v134_v21 = vpop.f32.mrf.mxu0 }
 0x100   :  { %v144_v22 = vmul.f32 0.5, %v140_v20  ;;  %v135_v23 = vadd.f32 %v167_v18, %v134_v21 }
 0x102   :  { %v146_v24 = vadd.f32 %v144_v22, %v44_v17  ;;  %v143_v25 = vmul.f32 0.5, %v135_v23 }
 0x104   :  { %148 = vst [vmem:[#allocation7 + $0x8] sm:$0xff] %v146_v24  ;;  %v145_v26 = vadd.f32 %v143_v25, %v43_v4 }
 0x106   :  { %147 = vst [vmem:[#allocation7] sm:$0xff] %v145_v26 }
 0x107   :  { %277 = shalt.err (!%p274_p0)
}
 0x108   :  { %160 = dma.vmem_to_hbm [thread:$0]  %s155_s25, 256, %s341_s3, [#allocation4], %s293_s15, %s293_s15, %s294_s16  }
 0x109   :  { %290 = dma.done.wait [#allocation4], 256  }
 0x10a   :  { %291 = vsyncadd [#allocation4], 4294967040 }
 0x10b   :  { %164 = vsyncpa [#allocation3], 1 }
 0x10c   :  { %165 = vsyncpa [#allocation6], 1 }
 0x10d   :  { %166 = vsyncpa [#allocation4], 1 }

</bundles_post_ra>
